<compile_context>
chip_gen: v6e
topology: v6e:2x2x1
jax: 0.10.0
libtpu: 0.0.40
codegen_flags: <defaults>
</compile_context>

<pallas_src>
import functools
import math

import jax
import jax.numpy as jnp
from jax.experimental import pallas as pl
from jax.experimental.pallas import tpu as pltpu


# ----------------------------------------------------------------------------
# Helpers
# ----------------------------------------------------------------------------
def _resident_spec(arr):
    """Full-array block, constant index map -> stays VMEM-resident across grid."""
    nd = arr.ndim
    return pl.BlockSpec(arr.shape, lambda *_: (0,) * nd,
                        memory_space=pltpu.VMEM)


# ============================================================================
# Kernel 1: CustomMappingNetwork  (z -> fused [B, map_output_dim])
# ============================================================================
def _mapping_kernel(z_ref,
                    w0_ref, b0_ref, w1_ref, b1_ref,
                    w2_ref, b2_ref, w3_ref, b3_ref,
                    y_ref):
    def linear(x, w_ref, b_ref, activate):
        y = jnp.dot(x, w_ref[...], preferred_element_type=jnp.float32) + b_ref[...]
        if activate:
            y = jnp.maximum(y, 0.2 * y)          # LeakyReLU(0.2) as a single vmax
        return y

    h = linear(z_ref[...], w0_ref, b0_ref, True)
    h = linear(h, w1_ref, b1_ref, True)
    h = linear(h, w2_ref, b2_ref, True)
    y_ref[...] = linear(h, w3_ref, b3_ref, False)


def mapping_network_forward(z, map_params, *, tile_b=512):
    """map_params: 4 (W[in,out], b[1,out]) tuples; freqs*15+30 already folded
    into the last layer at prepare_params() time, so the returned freq half is
    already scaled."""
    assert len(map_params) == 4, "mapping kernel is specialized to num_map_layers=4"
    B, z_dim = z.shape
    out_dim = map_params[-1][0].shape[1]
    tile_b = min(B, tile_b)

    flat_w = []
    for w, b in map_params:
        flat_w += [w, b]

    y = pl.pallas_call(
        _mapping_kernel,
        out_shape=jax.ShapeDtypeStruct((B, out_dim), jnp.float32),
        grid=(pl.cdiv(B, tile_b),),
        in_specs=[pl.BlockSpec((tile_b, z_dim), lambda i: (i, 0))]
                 + [_resident_spec(w) for w in flat_w],
        out_specs=pl.BlockSpec((tile_b, out_dim), lambda i: (i, 0)),
        compiler_params=pltpu.CompilerParams(
            dimension_semantics=("parallel",),
            vmem_limit_bytes=48 * 1024 * 1024),
    )(z, *flat_w)

    half = out_dim // 2
    return y[:, :half], y[:, half:]          # (pre-scaled) freqs, phases


# ============================================================================
# Kernel 2: FiLM'd SIREN stack  ->  lane-dense [B, 4, N] = stack([rgb, sigma])
# ============================================================================
def _siren_kernel(x_ref, rd_ref, freq_ref, phase_ref,
                  w_first_ref, b_first_ref,
                  w_hid_ref, b_hid_ref,
                  w_final_t_ref, b_final_ref,
                  w_cs_rd_ref, w_cs_x_ref, b_cs_ref,
                  w_cl_t_ref, b_cl_t_ref,
                  out_ref, *, num_hidden, dim_hidden):
    H = dim_hidden
    freqs = freq_ref[0]                      # (1, (L+1)*H); *15+30 pre-folded
    phases = phase_ref[0]                    # (1, (L+1)*H)

    def film(pre, idx):
        f = freqs[:, idx * H:(idx + 1) * H]
        p = phases[:, idx * H:(idx + 1) * H]
        # TODO(synk): bf16 sin (and the f*pre+p FMA) on v6e/v7x once accuracy allows.
        return jnp.sin(f * pre + p)

    x = x_ref[0]                             # (TN, dim_in)
    rd = rd_ref[0]                           # (TN, 3)

    # First FiLM layer.
    # TODO(synk): bf16 MXU operands (f32 accumulate) once accuracy budget allows.
    h = jnp.dot(x, w_first_ref[...], preferred_element_type=jnp.float32) + b_first_ref[...]
    h = film(h, 0)
    # Hidden FiLM layers (statically unrolled).
    for i in range(num_hidden):
        pre = jnp.dot(h, w_hid_ref[i], preferred_element_type=jnp.float32) + b_hid_ref[i]
        h = film(pre, i + 1)

    # --- Lane-dense heads: compute the 4-wide outputs transposed so the store
    # --- is a dense [4, TN] write (128-lane vst) instead of 4-lane masked stores.
    h_t = jnp.transpose(h)                                   # (H, TN), tile-aligned XLU transpose
    sigma_t = (jnp.dot(w_final_t_ref[...], h_t,
                       preferred_element_type=jnp.float32)
               + b_final_ref[...])                           # (1, TN)

    # Color head: Linear(cat([ray_dirs, h])) as two matmuls on split weight rows.
    pre = (jnp.dot(rd, w_cs_rd_ref[...], preferred_element_type=jnp.float32)
           + jnp.dot(h, w_cs_x_ref[...], preferred_element_type=jnp.float32)
           + b_cs_ref[...])
    rgb_h = film(pre, num_hidden + 1)                        # uses the last H slice
    rgb_lin_t = (jnp.dot(w_cl_t_ref[...], jnp.transpose(rgb_h),
                         preferred_element_type=jnp.float32)
                 + b_cl_t_ref[...])                          # (3, TN)
    rgb_t = 0.5 * jnp.tanh(0.5 * rgb_lin_t) + 0.5            # sigmoid via EUP tanh

    out_ref[0, 0:3, :] = rgb_t.astype(out_ref.dtype)
    out_ref[0, 3:4, :] = sigma_t.astype(out_ref.dtype)


def siren_forward(x, ray_dirs, freqs, phases, siren_weights, *, tile_n=512):
    (w_first, b_first, w_hid, b_hid, w_final_t, b_final,
     w_cs_rd, w_cs_x, b_cs, w_cl_t, b_cl_t) = siren_weights
    B, N, dim_in = x.shape
    H = w_first.shape[1]
    num_hidden = w_hid.shape[0]
    F = freqs.shape[-1]

    assert tile_n % 128 == 0, "tile_n must be a multiple of 128"
    assert H % 128 == 0, "dim_hidden must be a multiple of 128 (lane-dense head transpose)"

    # Remainder handling: pad the point axis up to a multiple of tile_n,
    # slice the padding off after the call.
    n_pad = pl.cdiv(N, tile_n) * tile_n
    if n_pad != N:
        pad = n_pad - N
        x = jnp.pad(x, ((0, 0), (0, pad), (0, 0)))
        ray_dirs = jnp.pad(ray_dirs, ((0, 0), (0, pad), (0, 0)))

    freqs3 = freqs.reshape(B, 1, F)
    phases3 = phases.reshape(B, 1, F)

    weights = [w_first, b_first, w_hid, b_hid, w_final_t, b_final,
               w_cs_rd, w_cs_x, b_cs, w_cl_t, b_cl_t]

    kernel = functools.partial(_siren_kernel, num_hidden=num_hidden, dim_hidden=H)

    out_t = pl.pallas_call(
        kernel,
        out_shape=jax.ShapeDtypeStruct((B, 4, n_pad), jnp.float32),
        grid=(B, n_pad // tile_n),
        in_specs=[
            pl.BlockSpec((1, tile_n, dim_in), lambda b, t: (b, t, 0)),
            pl.BlockSpec((1, tile_n, 3), lambda b, t: (b, t, 0)),
            pl.BlockSpec((1, 1, F), lambda b, t: (b, 0, 0)),
            pl.BlockSpec((1, 1, F), lambda b, t: (b, 0, 0)),
        ] + [_resident_spec(w) for w in weights],
        out_specs=pl.BlockSpec((1, 4, tile_n), lambda b, t: (b, 0, t)),
        compiler_params=pltpu.CompilerParams(
            dimension_semantics=("parallel", "parallel"),
            vmem_limit_bytes=48 * 1024 * 1024),
    )(x, ray_dirs, freqs3, phases3, *weights)

    # Wrapper-side layout plumbing back to the module's [B, N, 4] convention.
    out = jnp.transpose(out_t, (0, 2, 1))
    return out[:, :N, :]


def tallsiren_forward(x, z, ray_dirs, prepared_params, *, tile_n=512):
    map_prep, siren_prep = prepared_params
    freqs, phases = mapping_network_forward(z, map_prep)     # freqs already *15+30
    return siren_forward(x, ray_dirs, freqs, phases, siren_prep, tile_n=tile_n)


# ============================================================================
# One-time parameter prep for the kernels
# ============================================================================
def prepare_params(params):
    """Fold freqs*15+30 into the mapping net's last layer, stack hidden FiLM
    weights, split the color layer's ray-dir concat rows, and pre-transpose
    the tiny output heads for the lane-dense [B, 4, N] store."""
    map_params, (film_params, final_params, cs_params, cl_params) = params

    w_last, b_last = map_params[-1]
    F = w_last.shape[1] // 2
    scale = jnp.concatenate([jnp.full((1, F), 15.0, jnp.float32),
                             jnp.ones((1, F), jnp.float32)], axis=1)
    shift = jnp.concatenate([jnp.full((1, F), 30.0, jnp.float32),
                             jnp.zeros((1, F), jnp.float32)], axis=1)
    map_prep = list(map_params[:-1]) + [(w_last * scale, b_last * scale + shift)]

    assert len(film_params) >= 2, "need at least one hidden FiLM layer"
    w_first, b_first = film_params[0]
    w_hid = jnp.stack([w for (w, _) in film_params[1:]])     # (L-1, H, H)
    b_hid = jnp.stack([b for (_, b) in film_params[1:]])     # (L-1, 1, H)
    w_final, b_final = final_params                          # (H, 1), (1, 1)
    w_cs, b_cs = cs_params                                   # (H+3, H), (1, H)
    w_cl, b_cl = cl_params                                   # (H, 3), (1, 3)

    siren_prep = (w_first, b_first, w_hid, b_hid,
                  jnp.transpose(w_final), b_final,           # (1, H), (1, 1)
                  w_cs[:3, :], w_cs[3:, :], b_cs,            # split the concat
                  jnp.transpose(w_cl), jnp.transpose(b_cl))  # (3, H), (3, 1)
    return map_prep, siren_prep


# ============================================================================
# Deterministic parameter init mirroring the PyTorch module's initializers
# ============================================================================
def _linear_params(key, fan_in, fan_out, w_sampler):
    kw, kb = jax.random.split(key)
    w = w_sampler(kw, fan_out, fan_in)                 # torch [out, in] layout
    bound = 1.0 / math.sqrt(fan_in)                    # default nn.Linear bias
    b = jax.random.uniform(kb, (fan_out,), jnp.float32, -bound, bound)
    return jnp.transpose(w), b.reshape(1, fan_out)     # store [in,out], [1,out]


def _kaiming_leaky(key, fan_out, fan_in):
    gain = math.sqrt(2.0 / (1.0 + 0.2 ** 2))
    std = gain / math.sqrt(fan_in)
    return std * jax.random.normal(key, (fan_out, fan_in), jnp.float32)


def _frequency_init(freq):
    def sample(key, fan_out, fan_in):
        bound = math.sqrt(6.0 / fan_in) / freq
        return jax.random.uniform(key, (fan_out, fan_in), jnp.float32, -bound, bound)
    return sample


def _first_layer_film_sine(key, fan_out, fan_in):
    bound = 1.0 / fan_in
    return jax.random.uniform(key, (fan_out, fan_in), jnp.float32, -bound, bound)


def init_tallsiren(key, *, num_film_layers, num_map_layers, dim_in, dim_hidden, z_dim):
    L = num_film_layers - 2                            # FilmLayers in self.network
    map_out = (L + 1) * dim_hidden * 2

    # ---- CustomMappingNetwork ----
    dims = [z_dim] + [dim_hidden] * (num_map_layers - 1) + [map_out]
    map_params = []
    for i in range(num_map_layers):
        key, sub = jax.random.split(key)
        w, b = _linear_params(sub, dims[i], dims[i + 1], _kaiming_leaky)
        if i == num_map_layers - 1:
            w = w * 0.25                               # last-layer scaling
        map_params.append((w, b))

    freq_init = _frequency_init(25.0)

    # ---- FiLM SIREN stack ----
    film_params = []
    key, sub = jax.random.split(key)
    film_params.append(_linear_params(sub, dim_in, dim_hidden, _first_layer_film_sine))
    for _ in range(L - 1):
        key, sub = jax.random.split(key)
        film_params.append(_linear_params(sub, dim_hidden, dim_hidden, freq_init))

    key, sub = jax.random.split(key)
    final_params = _linear_params(sub, dim_hidden, 1, freq_init)
    key, sub = jax.random.split(key)
    cs_params = _linear_params(sub, dim_hidden + 3, dim_hidden, freq_init)
    key, sub = jax.random.split(key)
    cl_params = _linear_params(sub, dim_hidden, 3, freq_init)

    return map_params, (film_params, final_params, cs_params, cl_params)


# ============================================================================
# Pure-JAX reference (high-precision dots) for correctness checking
# ============================================================================
def reference_forward(x, z, ray_dirs, params):
    hp = functools.partial(jnp.einsum, precision="highest")
    map_params, (film_params, final_params, cs_params, cl_params) = params

    h = z
    for i, (w, b) in enumerate(map_params):
        h = hp("bi,io->bo", h, w) + b
        if i < len(map_params) - 1:
            h = jnp.where(h >= 0, h, 0.2 * h)
    half = h.shape[-1] // 2
    freqs = h[:, :half] * 15.0 + 30.0
    phases = h[:, half:]

    H = film_params[0][0].shape[1]
    y = x
    for i, (w, b) in enumerate(film_params):
        pre = hp("bnd,dh->bnh", y, w) + b
        f = freqs[:, None, i * H:(i + 1) * H]
        p = phases[:, None, i * H:(i + 1) * H]
        y = jnp.sin(f * pre + p)

    sigma = hp("bnh,ho->bno", y, final_params[0]) + final_params[1]

    cs_w, cs_b = cs_params
    pre = hp("bnd,dh->bnh", jnp.concatenate([ray_dirs, y], axis=-1), cs_w) + cs_b
    f = freqs[:, None, -H:]
    p = phases[:, None, -H:]
    rgb = jnp.sin(f * pre + p)
    rgb = jax.nn.sigmoid(hp("bnh,hc->bnc", rgb, cl_params[0]) + cl_params[1])
    return jnp.concatenate([rgb, sigma], axis=-1)


# ============================================================================
if __name__ == "__main__":
    # Small but structurally faithful configuration; N deliberately not a
    # multiple of tile_n to exercise the padded remainder tile.
    B, N = 2, 1000                          # latent codes, points per code
    DIM_IN, DIM_HIDDEN, Z_DIM = 2, 128, 32
    NUM_FILM_LAYERS, NUM_MAP_LAYERS = 6, 4  # -> 4 FiLM layers + color head
    TILE_N = 512                            # grid = (2, 2) -> 4 parallel steps

    key = jax.random.PRNGKey(0)
    key, kx, kz, kr = jax.random.split(key, 4)
    x = jax.random.uniform(kx, (B, N, DIM_IN), jnp.float32, -1.0, 1.0)
    z = jax.random.normal(kz, (B, Z_DIM), jnp.float32)
    rd = jax.random.normal(kr, (B, N, 3), jnp.float32)
    rd = rd / jnp.linalg.norm(rd, axis=-1, keepdims=True)

    raw_params = init_tallsiren(key, num_film_layers=NUM_FILM_LAYERS,
                                num_map_layers=NUM_MAP_LAYERS, dim_in=DIM_IN,
                                dim_hidden=DIM_HIDDEN, z_dim=Z_DIM)
    prepared = prepare_params(raw_params)

    out = tallsiren_forward(x, z, rd, prepared, tile_n=TILE_N)
    out = jax.block_until_ready(out)

    ref = reference_forward(x, z, rd, raw_params)
    assert out.shape == (B, N, 4)
    assert bool(jnp.all(jnp.isfinite(out)))
    max_diff = float(jnp.max(jnp.abs(out - ref)))
    assert jnp.allclose(out, ref, atol=2e-3, rtol=2e-3), f"max abs diff = {max_diff}"

    print("KERNEL_OK")
</pallas_src>

<mosaic_0001>
module attributes {stable_mosaic.version = 11 : i64} {
  func.func @_mapping_kernel(%arg0: i32, %arg1: memref<2x32xf32, #tpu.memory_space<vmem>>, %arg2: memref<32x128xf32, #tpu.memory_space<vmem>>, %arg3: memref<1x128xf32, #tpu.memory_space<vmem>>, %arg4: memref<128x128xf32, #tpu.memory_space<vmem>>, %arg5: memref<1x128xf32, #tpu.memory_space<vmem>>, %arg6: memref<128x128xf32, #tpu.memory_space<vmem>>, %arg7: memref<1x128xf32, #tpu.memory_space<vmem>>, %arg8: memref<128x1280xf32, #tpu.memory_space<vmem>>, %arg9: memref<1x1280xf32, #tpu.memory_space<vmem>>, %arg10: memref<2x1280xf32, #tpu.memory_space<vmem>>) attributes {dimension_semantics = [#tpu.dimension_semantics<parallel>], iteration_bounds = array<i64: 1>, scalar_prefetch = 0 : i64, scratch_operands = 0 : i64, tpu.core_type = #tpu.core_type<tc>, window_params = [{transform_indices = @transform_0, window_bounds = array<i64: 2, 32>}, {pipeline_mode = #tpu.pipeline_mode<synchronous>, transform_indices = @transform_1, window_bounds = array<i64: 32, 128>}, {pipeline_mode = #tpu.pipeline_mode<synchronous>, transform_indices = @transform_2, window_bounds = array<i64: 1, 128>}, {pipeline_mode = #tpu.pipeline_mode<synchronous>, transform_indices = @transform_3, window_bounds = array<i64: 128, 128>}, {pipeline_mode = #tpu.pipeline_mode<synchronous>, transform_indices = @transform_4, window_bounds = array<i64: 1, 128>}, {pipeline_mode = #tpu.pipeline_mode<synchronous>, transform_indices = @transform_5, window_bounds = array<i64: 128, 128>}, {pipeline_mode = #tpu.pipeline_mode<synchronous>, transform_indices = @transform_6, window_bounds = array<i64: 1, 128>}, {pipeline_mode = #tpu.pipeline_mode<synchronous>, transform_indices = @transform_7, window_bounds = array<i64: 128, 1280>}, {pipeline_mode = #tpu.pipeline_mode<synchronous>, transform_indices = @transform_8, window_bounds = array<i64: 1, 1280>}, {transform_indices = @transform_9, window_bounds = array<i64: 2, 1280>}]} {
    %c0 = arith.constant 0 : index
    %c0_0 = arith.constant 0 : index
    %0 = vector.load %arg1[%c0, %c0_0] : memref<2x32xf32, #tpu.memory_space<vmem>>, vector<2x32xf32>
    %c0_1 = arith.constant 0 : index
    %c0_2 = arith.constant 0 : index
    %1 = vector.load %arg2[%c0_1, %c0_2] : memref<32x128xf32, #tpu.memory_space<vmem>>, vector<32x128xf32>
    %cst = arith.constant dense<0.000000e+00> : vector<2x128xf32>
    %2 = tpu.matmul %0, %1, %cst {dimension_numbers = #tpu.dot_dimension_numbers<[1], [0], [0], [1], [0, 0, 1, 1], [], []>} : vector<2x32xf32>, vector<32x128xf32>, vector<2x128xf32> -> vector<2x128xf32>
    %c0_3 = arith.constant 0 : index
    %c0_4 = arith.constant 0 : index
    %3 = vector.load %arg3[%c0_3, %c0_4] : memref<1x128xf32, #tpu.memory_space<vmem>>, vector<1x128xf32>
    %4 = vector.broadcast %3 : vector<1x128xf32> to vector<2x128xf32>
    %5 = arith.addf %2, %4 : vector<2x128xf32>
    %cst_5 = arith.constant 2.000000e-01 : f32
    %6 = vector.broadcast %cst_5 : f32 to vector<2x128xf32>
    %7 = arith.mulf %6, %5 : vector<2x128xf32>
    %8 = arith.maximumf %5, %7 : vector<2x128xf32>
    %c0_6 = arith.constant 0 : index
    %c0_7 = arith.constant 0 : index
    %9 = vector.load %arg4[%c0_6, %c0_7] : memref<128x128xf32, #tpu.memory_space<vmem>>, vector<128x128xf32>
    %cst_8 = arith.constant dense<0.000000e+00> : vector<2x128xf32>
    %10 = tpu.matmul %8, %9, %cst_8 {dimension_numbers = #tpu.dot_dimension_numbers<[1], [0], [0], [1], [0, 0, 1, 1], [], []>} : vector<2x128xf32>, vector<128x128xf32>, vector<2x128xf32> -> vector<2x128xf32>
    %c0_9 = arith.constant 0 : index
    %c0_10 = arith.constant 0 : index
    %11 = vector.load %arg5[%c0_9, %c0_10] : memref<1x128xf32, #tpu.memory_space<vmem>>, vector<1x128xf32>
    %12 = vector.broadcast %11 : vector<1x128xf32> to vector<2x128xf32>
    %13 = arith.addf %10, %12 : vector<2x128xf32>
    %cst_11 = arith.constant 2.000000e-01 : f32
    %14 = vector.broadcast %cst_11 : f32 to vector<2x128xf32>
    %15 = arith.mulf %14, %13 : vector<2x128xf32>
    %16 = arith.maximumf %13, %15 : vector<2x128xf32>
    %c0_12 = arith.constant 0 : index
    %c0_13 = arith.constant 0 : index
    %17 = vector.load %arg6[%c0_12, %c0_13] : memref<128x128xf32, #tpu.memory_space<vmem>>, vector<128x128xf32>
    %cst_14 = arith.constant dense<0.000000e+00> : vector<2x128xf32>
    %18 = tpu.matmul %16, %17, %cst_14 {dimension_numbers = #tpu.dot_dimension_numbers<[1], [0], [0], [1], [0, 0, 1, 1], [], []>} : vector<2x128xf32>, vector<128x128xf32>, vector<2x128xf32> -> vector<2x128xf32>
    %c0_15 = arith.constant 0 : index
    %c0_16 = arith.constant 0 : index
    %19 = vector.load %arg7[%c0_15, %c0_16] : memref<1x128xf32, #tpu.memory_space<vmem>>, vector<1x128xf32>
    %20 = vector.broadcast %19 : vector<1x128xf32> to vector<2x128xf32>
    %21 = arith.addf %18, %20 : vector<2x128xf32>
    %cst_17 = arith.constant 2.000000e-01 : f32
    %22 = vector.broadcast %cst_17 : f32 to vector<2x128xf32>
    %23 = arith.mulf %22, %21 : vector<2x128xf32>
    %24 = arith.maximumf %21, %23 : vector<2x128xf32>
    %c0_18 = arith.constant 0 : index
    %c0_19 = arith.constant 0 : index
    %25 = vector.load %arg8[%c0_18, %c0_19] : memref<128x1280xf32, #tpu.memory_space<vmem>>, vector<128x1280xf32>
    %cst_20 = arith.constant dense<0.000000e+00> : vector<2x1280xf32>
    %26 = tpu.matmul %24, %25, %cst_20 {dimension_numbers = #tpu.dot_dimension_numbers<[1], [0], [0], [1], [0, 0, 1, 1], [], []>} : vector<2x128xf32>, vector<128x1280xf32>, vector<2x1280xf32> -> vector<2x1280xf32>
    %c0_21 = arith.constant 0 : index
    %c0_22 = arith.constant 0 : index
    %27 = vector.load %arg9[%c0_21, %c0_22] : memref<1x1280xf32, #tpu.memory_space<vmem>>, vector<1x1280xf32>
    %28 = vector.broadcast %27 : vector<1x1280xf32> to vector<2x1280xf32>
    %29 = arith.addf %26, %28 : vector<2x1280xf32>
    %c0_23 = arith.constant 0 : index
    %c0_24 = arith.constant 0 : index
    %30 = vector.load %arg10[%c0_23, %c0_24] : memref<2x1280xf32, #tpu.memory_space<vmem>>, vector<2x1280xf32>
    tpu.vector_store %arg10[%c0_23, %c0_24], %29 {strides = array<i32>} : memref<2x1280xf32, #tpu.memory_space<vmem>>, vector<2x1280xf32>,
    return
  }
  func.func @transform_0(%arg0: i32) -> (i32, i32) {
    %c0_i32 = arith.constant 0 : i32
    %c0_i32_0 = arith.constant 0 : i32
    return %arg0, %c0_i32 : i32, i32
  }
  func.func @transform_1(%arg0: i32) -> (i32, i32) {
    %c0_i32 = arith.constant 0 : i32
    %c0_i32_0 = arith.constant 0 : i32
    %c0_i32_1 = arith.constant 0 : i32
    return %c0_i32, %c0_i32_0 : i32, i32
  }
  func.func @transform_2(%arg0: i32) -> (i32, i32) {
    %c0_i32 = arith.constant 0 : i32
    %c0_i32_0 = arith.constant 0 : i32
    %c0_i32_1 = arith.constant 0 : i32
    return %c0_i32, %c0_i32_0 : i32, i32
  }
  func.func @transform_3(%arg0: i32) -> (i32, i32) {
    %c0_i32 = arith.constant 0 : i32
    %c0_i32_0 = arith.constant 0 : i32
    %c0_i32_1 = arith.constant 0 : i32
    return %c0_i32, %c0_i32_0 : i32, i32
  }
  func.func @transform_4(%arg0: i32) -> (i32, i32) {
    %c0_i32 = arith.constant 0 : i32
    %c0_i32_0 = arith.constant 0 : i32
    %c0_i32_1 = arith.constant 0 : i32
    return %c0_i32, %c0_i32_0 : i32, i32
  }
  func.func @transform_5(%arg0: i32) -> (i32, i32) {
    %c0_i32 = arith.constant 0 : i32
    %c0_i32_0 = arith.constant 0 : i32
    %c0_i32_1 = arith.constant 0 : i32
    return %c0_i32, %c0_i32_0 : i32, i32
  }
  func.func @transform_6(%arg0: i32) -> (i32, i32) {
    %c0_i32 = arith.constant 0 : i32
    %c0_i32_0 = arith.constant 0 : i32
    %c0_i32_1 = arith.constant 0 : i32
    return %c0_i32, %c0_i32_0 : i32, i32
  }
  func.func @transform_7(%arg0: i32) -> (i32, i32) {
    %c0_i32 = arith.constant 0 : i32
    %c0_i32_0 = arith.constant 0 : i32
    %c0_i32_1 = arith.constant 0 : i32
    return %c0_i32, %c0_i32_0 : i32, i32
  }
  func.func @transform_8(%arg0: i32) -> (i32, i32) {
    %c0_i32 = arith.constant 0 : i32
    %c0_i32_0 = arith.constant 0 : i32
    %c0_i32_1 = arith.constant 0 : i32
    return %c0_i32, %c0_i32_0 : i32, i32
  }
  func.func @transform_9(%arg0: i32) -> (i32, i32) {
    %c0_i32 = arith.constant 0 : i32
    %c0_i32_0 = arith.constant 0 : i32
    return %arg0, %c0_i32 : i32, i32
  }
}

</mosaic_0001>

<bundles_post_ra>
// kernel: tpu_custom_call.1
= control target key start
LH: loop header
LB: loop body
LE: loop exit
PB: predicated region body
PF: predicated region fallthrough
CT: control target
= control target key end

     0   :  { %14 = vsyncpa [#allocation3], 0  ;;  %s1446_s0 = inlined_call_operand.hbm [shape: f32[2,32], index: 0, kind: input, shape index: {}]   ;;  %s1447_s1 = inlined_call_operand.hbm [shape: f32[32,128], index: 1, kind: input, shape index: {}]   ;;  %s1448_s2 = inlined_call_operand.vmem [shape: f32[1,128], index: 2, kind: input, shape index: {}]   ;;  %s1449_s3 = inlined_call_operand.hbm [shape: f32[128,128], index: 3, kind: input, shape index: {}]   ;;  %s1450_s4 = inlined_call_operand.vmem [shape: f32[1,128], index: 4, kind: input, shape index: {}]   ;;  %s1451_s5 = inlined_call_operand.hbm [shape: f32[128,128], index: 5, kind: input, shape index: {}]   ;;  %s1452_s6 = inlined_call_operand.vmem [shape: f32[1,128], index: 6, kind: input, shape index: {}]   ;;  %s1453_s7 = inlined_call_operand.hbm [shape: f32[128,1280], index: 7, kind: input, shape index: {}]   ;;  %s1454_s8 = inlined_call_operand.vmem [shape: f32[1,1280], index: 8, kind: input, shape index: {}]   ;;  %s1455_s9 = inlined_call_operand.hbm [shape: f32[2,1280], index: 9, kind: output, shape index: {}]  }
   0x1   :  { %15 = vsyncpa [#allocation6], 0 }
   0x2   :  { %16 = vsyncpa [#allocation9], 0 }
   0x3   :  { %17 = vsyncpa [#allocation4], 0  ;;  %s1287_s30 = smov [#allocation5]  }
   0x4   :  { %s33_s10 = sshll.u32 %s1287_s30, 4  ;;  %s34_s10 = int_to_ptr.vmem [resolvable:$true] %s33_s10 }
   0x5   :  { %s1167_s11 = scalar_lea.vmem %s34_s10, 512  ;;  %p1172_p1 = scmp.lt.s32.totalorder %s34_s10, %s34_s10 }
   0x6   :  { %p1168_p0 = scmp.ne.s32.totalorder %s34_s10, %s1167_s11  ;;  %p1173_p2 = scmp.lt.s32.totalorder %s1167_s11, %s1167_s11 }
   0x8   :  { %p1174_p3 = por %p1173_p2, %p1172_p1 }
   0xa   :  { %p1175_p4 = pnand %p1174_p3, %p1168_p0 }
   0xc   :  { %1178 = shalt.err (!%p1175_p4)
}
   0xd   :  { %s1288_s12 = smov 128   ;;  %s1289_s13 = smov 8  }
   0xe   :  { %39 = dma.hbm_to_vmem [thread:$0]  %s1447_s1, 512, %s34_s10, [#allocation6], %s1288_s12, %s1288_s12, %s1289_s13  }
   0xf   :  { %s1290_s16 = smov [#allocation8]   ;;  %s1291_s18 = smov [#allocation2]  }
  0x10   :  { %s61_s17 = sshll.u32 %s1290_s16, 4  ;;  %s24_s19 = sshll.u32 %s1291_s18, 4  ;;  %s62_s17 = int_to_ptr.vmem [resolvable:$true] %s61_s17  ;;  %s25_s19 = int_to_ptr.vmem [resolvable:$true] %s24_s19 }
  0x11   :  { %s1187_s20 = scalar_lea.vmem %s62_s17, 2048  ;;  %p1192_p6 = scmp.lt.s32.totalorder %s62_s17, %s62_s17 }
  0x12   :  { %p1188_p5 = scmp.ne.s32.totalorder %s62_s17, %s1187_s20  ;;  %p1193_p7 = scmp.lt.s32.totalorder %s1187_s20, %s1187_s20 }
  0x14   :  { %p1194_p8 = por %p1193_p7, %p1192_p6 }
  0x16   :  { %p1195_p9 = pnand %p1194_p8, %p1188_p5 }
  0x18   :  { %1198 = shalt.err (!%p1195_p9)
}
  0x19   :  { %67 = dma.hbm_to_vmem [thread:$0]  %s1451_s5, 2048, %s62_s17, [#allocation9], %s1288_s12, %s1288_s12, %s1289_s13  }
  0x1a   :  { %s1207_s1 = scalar_lea.vmem %s25_s19, 32  ;;  %p1212_p11 = scmp.lt.s32.totalorder %s25_s19, %s25_s19 }
  0x1b   :  { %p1208_p10 = scmp.ne.s32.totalorder %s25_s19, %s1207_s1  ;;  %p1213_p12 = scmp.lt.s32.totalorder %s1207_s1, %s1207_s1 }
  0x1d   :  { %p1214_p13 = por %p1213_p12, %p1212_p11 }
  0x1f   :  { %p1215_p0 = pnand %p1214_p13, %p1208_p10 }
  0x21   :  { %1218 = shalt.err (!%p1215_p0)
}
  0x22   :  { %27 = dma.hbm_to_vmem [thread:$0]  %s1446_s0, 32, %s25_s19, [#allocation3]  }
  0x23   :  { %s1292_s25 = smov [#allocation7]   ;;  %s1293_s27 = smov [#allocation10]  }
  0x24   :  { %s47_s26 = sshll.u32 %s1292_s25, 4  ;;  %s75_s28 = sshll.u32 %s1293_s27, 4  ;;  %s48_s26 = int_to_ptr.vmem [resolvable:$true] %s47_s26  ;;  %s76_s28 = int_to_ptr.vmem [resolvable:$true] %s75_s28 }
  0x25   :  { %s1227_s29 = scalar_lea.vmem %s48_s26, 2048  ;;  %p1232_p2 = scmp.lt.s32.totalorder %s48_s26, %s48_s26 }
  0x26   :  { %p1228_p1 = scmp.ne.s32.totalorder %s48_s26, %s1227_s29  ;;  %p1233_p3 = scmp.lt.s32.totalorder %s1227_s29, %s1227_s29 }
  0x28   :  { %p1234_p4 = por %p1233_p3, %p1232_p2 }
  0x2a   :  { %p1235_p5 = pnand %p1234_p4, %p1228_p1 }
  0x2c   :  { %1238 = shalt.err (!%p1235_p5)
}
  0x2d   :  { %53 = dma.hbm_to_vmem [thread:$0]  %s1449_s3, 2048, %s48_s26, [#allocation6], %s1288_s12, %s1288_s12, %s1289_s13  }
  0x2e   :  { %s1247_s0 = scalar_lea.vmem %s76_s28, 20480  ;;  %p1252_p7 = scmp.lt.s32.totalorder %s76_s28, %s76_s28 }
  0x2f   :  { %p1248_p6 = scmp.ne.s32.totalorder %s76_s28, %s1247_s0  ;;  %p1253_p8 = scmp.lt.s32.totalorder %s1247_s0, %s1247_s0 }
  0x31   :  { %p1254_p9 = por %p1253_p8, %p1252_p7 }
  0x33   :  { %p1255_p10 = pnand %p1254_p9, %p1248_p6 }
  0x35   :  { %1258 = shalt.err (!%p1255_p10)
}
  0x36   :  { %s1294_s10 = smov 1280   ;;  %s1295_s11 = smov 80  }
  0x37   :  { %81 = dma.hbm_to_vmem [thread:$0]  %s1453_s7, 20480, %s76_s28, [#allocation9], %s1294_s10, %s1294_s10, %s1295_s11  }
  0x38   :  { %1279 = dma.done.wait [#allocation3], 32  }
  0x39   :  { %1280 = vsyncadd [#allocation3], 4294967264 }
  0x3a   :  { %1281 = dma.done.wait [#allocation6], 2560  }
  0x3b   :  { %1282 = vsyncadd [#allocation6], 4294964736 }
  0x3c   :  { %1283 = dma.done.wait [#allocation9], 22528  }
  0x3d   :  { %1284 = vsyncadd [#allocation9], 4294944768  ;;  %v1296_v0 = vmov 0.0   ;;  %vm1297_vm0 = vmmov 0   ;;  %v103_v1 = vld [vmem:[#allocation5 + $0x18] sm:$0xff]  ;;  %v102_v2 = vld [vmem:[#allocation5 + $0x10] sm:$0xff] }
  0x3e   :  { %1065 = vmatprep.subr.mxu0 %v1296_v0  ;;  %1073 = vmatprep.mubr.msk.f32.mxu0 %vm1297_vm0, %v1296_v0  ;;  %v202_v3 = vld [vmem:[#allocation7 + $0x78] sm:$0xff]  ;;  %v101_v4 = vld [vmem:[#allocation5 + $0x8] sm:$0xff]  ;;  %v201_v5 = vld [vmem:[#allocation7 + $0x70] sm:$0xff]  ;;  %vm111_vm1 = vcmask 261120   ;;  %s1299_s19 = smov [#allocation11]  }
  0x3f   :  { %1076 = vmatprep.subr.mxu1 %v1296_v0  ;;  %1108 = vmatprep.mubr.msk.f32.mxu1 %vm1297_vm0, %v1296_v0  ;;  %v200_v6 = vld [vmem:[#allocation7 + $0x68] sm:$0xff]  ;;  %v100_v7 = vld [vmem:[#allocation5] sm:$0xff]  ;;  %v99_v8 = vld [vmem:[#allocation2] sm:$0x3]  ;;  %s1010_s20 = sshll.u32 %s1299_s19, 4  ;;  %s1011_s20 = int_to_ptr.vmem [resolvable:$true] %s1010_s20 }
  0x40   :  { %1066 = vmatpush3.msra.mxu0 %v103_v1  ;;  %1077 = vmatpush3.msra.mxu1 %v202_v3  ;;  %v199_v9 = vld [vmem:[#allocation7 + $0x60] sm:$0xff]  ;;  %v198_v10 = vld [vmem:[#allocation7 + $0x58] sm:$0xff]  ;;  %v197_v11 = vld [vmem:[#allocation7 + $0x50] sm:$0xff]  ;;  %s1259_s21 = scalar_lea.vmem %s1011_s20, 320  ;;  %p1264_p12 = scmp.lt.s32.totalorder %s1011_s20, %s1011_s20 }
  0x41   :  { %1067 = vmatprep.subr.mxu0 %v1296_v0  ;;  %1078 = vmatprep.subr.mxu1 %v1296_v0  ;;  %v196_v12 = vld [vmem:[#allocation7 + $0x48] sm:$0xff]  ;;  %v195_v13 = vld [vmem:[#allocation7 + $0x40] sm:$0xff]  ;;  %v194_v14 = vld [vmem:[#allocation7 + $0x38] sm:$0xff]  ;;  %p1260_p11 = scmp.ne.s32.totalorder %s1011_s20, %s1259_s21  ;;  %p1265_p13 = scmp.lt.s32.totalorder %s1259_s21, %s1259_s21 }
  0x42   :  { %1068 = vmatpush3.msra.mxu0 %v102_v2  ;;  %1079 = vmatpush3.msra.mxu1 %v201_v5  ;;  %v193_v15 = vld [vmem:[#allocation7 + $0x30] sm:$0xff]  ;;  %v192_v16 = vld [vmem:[#allocation7 + $0x28] sm:$0xff]  ;;  %v191_v17 = vld [vmem:[#allocation7 + $0x20] sm:$0xff] }
  0x43   :  { %1069 = vmatprep.subr.mxu0 %v1296_v0  ;;  %1080 = vmatprep.subr.mxu1 %v1296_v0  ;;  %v190_v18 = vld [vmem:[#allocation7 + $0x18] sm:$0xff]  ;;  %v189_v19 = vld [vmem:[#allocation7 + $0x10] sm:$0xff]  ;;  %v188_v20 = vld [vmem:[#allocation7 + $0x8] sm:$0xff]  ;;  %p1266_p0 = por %p1265_p13, %p1264_p12 }
  0x44   :  { %1070 = vmatpush3.msra.mxu0 %v101_v4  ;;  %1081 = vmatpush3.msra.mxu1 %v200_v6  ;;  %v187_v21 = vld [vmem:[#allocation7] sm:$0xff]  ;;  %v297_v22 = vld [vmem:[#allocation8 + $0x78] sm:$0xff]  ;;  %v296_v23 = vld [vmem:[#allocation8 + $0x70] sm:$0xff] }
  0x45   :  { %1071 = vmatprep.subr.mxu0 %v1296_v0  ;;  %1082 = vmatprep.subr.mxu1 %v1296_v0  ;;  %v295_v24 = vld [vmem:[#allocation8 + $0x68] sm:$0xff]  ;;  %v294_v25 = vld [vmem:[#allocation8 + $0x60] sm:$0xff]  ;;  %v293_v26 = vld [vmem:[#allocation8 + $0x58] sm:$0xff]  ;;  %p1267_p1 = pnand %p1266_p0, %p1260_p11 }
  0x46   :  { %1072 = vmatpush3.msra.mxu0 %v100_v7  ;;  %1083 = vmatpush3.msra.mxu1 %v199_v9  ;;  %v292_v27 = vld [vmem:[#allocation8 + $0x50] sm:$0xff]  ;;  %v291_v28 = vld [vmem:[#allocation8 + $0x48] sm:$0xff]  ;;  %v290_v29 = vld [vmem:[#allocation8 + $0x40] sm:$0xff] }
  0x47   :  { %1074 = vmatmul.mubr.msk.f32.vlgmr.msra.gmra.mxu0 %vm111_vm1, %v99_v8  ;;  %1084 = vmatprep.subr.mxu1 %v1296_v0  ;;  %v289_v30 = vld [vmem:[#allocation8 + $0x38] sm:$0xff]  ;;  %v288_v31 = vld [vmem:[#allocation8 + $0x30] sm:$0xff]  ;;  %v287_v32 = vld [vmem:[#allocation8 + $0x28] sm:$0xff] }
  0x48   :  { %1111 = vmatprep.subr.mxu0 %v1296_v0  ;;  %1085 = vmatpush3.msra.mxu1 %v198_v10  ;;  %v286_v33 = vld [vmem:[#allocation8 + $0x20] sm:$0xff]  ;;  %v1021_v34 = vld [vmem:[%s1448_s2] ss:$0 sm:$0xff]  ;;  %v285_v40 = vld [vmem:[#allocation8 + $0x18] sm:$0xff] }
  0x49   :  { %1143 = vmatprep.mubr.msk.f32.mxu0 %vm1297_vm0, %v1296_v0  ;;  %1086 = vmatprep.subr.mxu1 %v1296_v0  ;;  %v284_v41 = vld [vmem:[#allocation8 + $0x10] sm:$0xff]  ;;  %v283_v42 = vld [vmem:[#allocation8 + $0x8] sm:$0xff]  ;;  %v282_v43 = vld [vmem:[#allocation8] sm:$0xff] }
  0x4a   :  { %1087 = vmatpush3.msra.mxu1 %v197_v11  ;;  %1112 = vmatpush3.msra.mxu0 %v297_v22  ;;  %v528_v44 = vld [vmem:[#allocation10 + $0x4b8] sm:$0xff]  ;;  %v530_v45 = vld [vmem:[#allocation10 + $0x4c8] sm:$0xff]  ;;  %v527_v46 = vld [vmem:[#allocation10 + $0x4b0] sm:$0xff] }
  0x4b   :  { %1088 = vmatprep.subr.mxu1 %v1296_v0  ;;  %1113 = vmatprep.subr.mxu0 %v1296_v0  ;;  %v518_v47 = vld [vmem:[#allocation10 + $0x468] sm:$0xff]  ;;  %v517_v48 = vld [vmem:[#allocation10 + $0x460] sm:$0xff]  ;;  %v508_v49 = vld [vmem:[#allocation10 + $0x418] sm:$0xff] }
  0x4c   :  { %1089 = vmatpush3.msra.mxu1 %v196_v12  ;;  %1114 = vmatpush3.msra.mxu0 %v296_v23  ;;  %v507_v50 = vld [vmem:[#allocation10 + $0x410] sm:$0xff]  ;;  %v498_v51 = vld [vmem:[#allocation10 + $0x3c8] sm:$0xff]  ;;  %v497_v52 = vld [vmem:[#allocation10 + $0x3c0] sm:$0xff] }
  0x4d   :  { %1090 = vmatprep.subr.mxu1 %v1296_v0  ;;  %1115 = vmatprep.subr.mxu0 %v1296_v0  ;;  %v488_v53 = vld [vmem:[#allocation10 + $0x378] sm:$0xff]  ;;  %v487_v54 = vld [vmem:[#allocation10 + $0x370] sm:$0xff]  ;;  %v478_v55 = vld [vmem:[#allocation10 + $0x328] sm:$0xff] }
  0x4e   :  { %1091 = vmatpush3.msra.mxu1 %v195_v13  ;;  %1116 = vmatpush3.msra.mxu0 %v295_v24  ;;  %v477_v56 = vld [vmem:[#allocation10 + $0x320] sm:$0xff]  ;;  %v468_v57 = vld [vmem:[#allocation10 + $0x2d8] sm:$0xff]  ;;  %v467_v58 = vld [vmem:[#allocation10 + $0x2d0] sm:$0xff] }
  0x4f   :  { %1092 = vmatprep.subr.mxu1 %v1296_v0  ;;  %1117 = vmatprep.subr.mxu0 %v1296_v0  ;;  %v458_v59 = vld [vmem:[#allocation10 + $0x288] sm:$0xff]  ;;  %v457_v60 = vld [vmem:[#allocation10 + $0x280] sm:$0xff]  ;;  %v448_v61 = vld [vmem:[#allocation10 + $0x238] sm:$0xff] }
  0x50   :  { %1093 = vmatpush3.msra.mxu1 %v194_v14  ;;  %1118 = vmatpush3.msra.mxu0 %v294_v25  ;;  %v447_v62 = vld [vmem:[#allocation10 + $0x230] sm:$0xff]  ;;  %v438_v63 = vld [vmem:[#allocation10 + $0x1e8] sm:$0xff]  ;;  %v437_v1 = vld [vmem:[#allocation10 + $0x1e0] sm:$0xff] }
  0x51   :  { %1094 = vmatprep.subr.mxu1 %v1296_v0  ;;  %1119 = vmatprep.subr.mxu0 %v1296_v0  ;;  %v428_v2 = vld [vmem:[#allocation10 + $0x198] sm:$0xff]  ;;  %v427_v3 = vld [vmem:[#allocation10 + $0x190] sm:$0xff]  ;;  %v418_v4 = vld [vmem:[#allocation10 + $0x148] sm:$0xff] }
  0x52   :  { %1095 = vmatpush3.msra.mxu1 %v193_v15  ;;  %1120 = vmatpush3.msra.mxu0 %v293_v26  ;;  %v417_v5 = vld [vmem:[#allocation10 + $0x140] sm:$0xff]  ;;  %v408_v6 = vld [vmem:[#allocation10 + $0xf8] sm:$0xff]  ;;  %v407_v7 = vld [vmem:[#allocation10 + $0xf0] sm:$0xff] }
  0x53   :  { %1096 = vmatprep.subr.mxu1 %v1296_v0  ;;  %1121 = vmatprep.subr.mxu0 %v1296_v0  ;;  %v1023_v8 = vld [vmem:[%s1450_s4] ss:$0 sm:$0xff]  ;;  %v529_v14 = vld [vmem:[#allocation10 + $0x4c0] sm:$0xff]  ;;  %v520_v15 = vld [vmem:[#allocation10 + $0x478] sm:$0xff] }
  0x54   :  { %1097 = vmatpush3.msra.mxu1 %v192_v16  ;;  %1122 = vmatpush3.msra.mxu0 %v292_v27  ;;  %v519_v16 = vld [vmem:[#allocation10 + $0x470] sm:$0xff]  ;;  %v489_v22 = vld [vmem:[#allocation10 + $0x380] sm:$0xff]  ;;  %v480_v23 = vld [vmem:[#allocation10 + $0x338] sm:$0xff] }
  0x55   :  { %1098 = vmatprep.subr.mxu1 %v1296_v0  ;;  %1123 = vmatprep.subr.mxu0 %v1296_v0  ;;  %v479_v24 = vld [vmem:[#allocation10 + $0x330] sm:$0xff]  ;;  %v470_v25 = vld [vmem:[#allocation10 + $0x2e8] sm:$0xff]  ;;  %v469_v26 = vld [vmem:[#allocation10 + $0x2e0] sm:$0xff] }
  0x56   :  { %1099 = vmatpush3.msra.mxu1 %v191_v17  ;;  %1124 = vmatpush3.msra.mxu0 %v291_v28  ;;  %v510_v17 = vld [vmem:[#allocation10 + $0x428] sm:$0xff]  ;;  %v460_v27 = vld [vmem:[#allocation10 + $0x298] sm:$0xff]  ;;  %v459_v28 = vld [vmem:[#allocation10 + $0x290] sm:$0xff] }
  0x57   :  { %1100 = vmatprep.subr.mxu1 %v1296_v0  ;;  %1125 = vmatprep.subr.mxu0 %v1296_v0 }
  0x58   :  { %1101 = vmatpush3.msra.mxu1 %v190_v18  ;;  %1126 = vmatpush3.msra.mxu0 %v290_v29  ;;  %v509_v18 = vld [vmem:[#allocation10 + $0x420] sm:$0xff]  ;;  %v450_v29 = vld [vmem:[#allocation10 + $0x248] sm:$0xff] }
  0x59   :  { %1102 = vmatprep.subr.mxu1 %v1296_v0  ;;  %1127 = vmatprep.subr.mxu0 %v1296_v0 }
  0x5a   :  { %1103 = vmatpush3.msra.mxu1 %v189_v19  ;;  %1128 = vmatpush3.msra.mxu0 %v289_v30  ;;  %v500_v19 = vld [vmem:[#allocation10 + $0x3d8] sm:$0xff]  ;;  %v449_v30 = vld [vmem:[#allocation10 + $0x240] sm:$0xff] }
  0x5b   :  { %1104 = vmatprep.subr.mxu1 %v1296_v0  ;;  %1129 = vmatprep.subr.mxu0 %v1296_v0 }
  0x5c   :  { %1105 = vmatpush3.msra.mxu1 %v188_v20  ;;  %1130 = vmatpush3.msra.mxu0 %v288_v31  ;;  %v499_v20 = vld [vmem:[#allocation10 + $0x3d0] sm:$0xff]  ;;  %v440_v31 = vld [vmem:[#allocation10 + $0x1f8] sm:$0xff] }
  0x5d   :  { %1106 = vmatprep.subr.mxu1 %v1296_v0  ;;  %1131 = vmatprep.subr.mxu0 %v1296_v0 }
  0x5e   :  { %1107 = vmatpush3.msra.mxu1 %v187_v21  ;;  %1132 = vmatpush3.msra.mxu0 %v287_v32  ;;  %v490_v21 = vld [vmem:[#allocation10 + $0x388] sm:$0xff]  ;;  %v439_v32 = vld [vmem:[#allocation10 + $0x1f0] sm:$0xff] }
  0x5f   :  { %1133 = vmatprep.subr.mxu0 %v1296_v0  ;;  %591 = vmatprep.subr.mxu1 %v528_v44  ;;  %v390_v44 = vld [vmem:[#allocation10 + $0x68] sm:$0xff] }
  0x60   :  { %1134 = vmatpush3.msra.mxu0 %v286_v33  ;;  %v430_v33 = vld [vmem:[#allocation10 + $0x1a8] sm:$0xff] }
  0x61   :  { %1135 = vmatprep.subr.mxu0 %v1296_v0 }
  0x62   :  { %1136 = vmatpush3.msra.mxu0 %v285_v40  ;;  %v400_v40 = vld [vmem:[#allocation10 + $0xb8] sm:$0xff] }
  0x63   :  { %1137 = vmatprep.subr.mxu0 %v1296_v0 }
  0x64   :  { %1138 = vmatpush3.msra.mxu0 %v284_v41  ;;  %v397_v41 = vld [vmem:[#allocation10 + $0xa0] sm:$0xff] }
  0x65   :  { %1139 = vmatprep.subr.mxu0 %v1296_v0 }
  0x66   :  { %1140 = vmatpush3.msra.mxu0 %v283_v42  ;;  %v399_v42 = vld [vmem:[#allocation10 + $0xb0] sm:$0xff] }
  0x67   :  { %1141 = vmatprep.subr.mxu0 %v1296_v0 }
  0x68   :  { %1142 = vmatpush3.msra.mxu0 %v282_v43  ;;  %v388_v43 = vld [vmem:[#allocation10 + $0x58] sm:$0xff] }
  0x69   :  { %662 = vmatprep.subr.mxu0 %v530_v45  ;;  %v387_v45 = vld [vmem:[#allocation10 + $0x50] sm:$0xff] }
 0x107   :  { %v181_v35 = vpop.f32.mrf.mxu0 }
 0x108   :  { %v182_v36 = vadd.f32 %v1021_v34, %v181_v35  ;;  %v429_v34 = vld [vmem:[#allocation10 + $0x1a0] sm:$0xff]  ;;  %v420_v35 = vld [vmem:[#allocation10 + $0x158] sm:$0xff] }
 0x109   :  { %v1075_v37 = vpop.f32.mrf.mxu0 }
 0x10a   :  { %v185_v38 = vmul.f32 0.2, %v182_v36  ;;  %v410_v37 = vld [vmem:[#allocation10 + $0x108] sm:$0xff] }
 0x10c   :  { %v186_v39 = vmax.f32 %v182_v36, %v185_v38  ;;  %v419_v36 = vld [vmem:[#allocation10 + $0x150] sm:$0xff]  ;;  %v409_v38 = vld [vmem:[#allocation10 + $0x100] sm:$0xff] }
 0x10e   :  { %1109 = vmatmul.mubr.f32.vlgmr.msra.gmra.mxu1 %v186_v39  ;;  %v398_v39 = vld [vmem:[#allocation10 + $0xa8] sm:$0xff] }
 0x10f   :  { %655 = vmatprep.mubr.f32.mxu1 %v1296_v0  ;;  %592 = vmatpush1.msra.mxu1 %v527_v46  ;;  %v389_v46 = vld [vmem:[#allocation10 + $0x60] sm:$0xff] }
 0x110   :  { %593 = vmatprep.subr.mxu1 %v518_v47  ;;  %v378_v47 = vld [vmem:[#allocation10 + $0x8] sm:$0xff] }
 0x111   :  { %594 = vmatpush1.msra.mxu1 %v517_v48  ;;  %v380_v48 = vld [vmem:[#allocation10 + $0x18] sm:$0xff] }
 0x112   :  { %595 = vmatprep.subr.mxu1 %v508_v49  ;;  %v377_v49 = vld [vmem:[#allocation10] sm:$0xff] }
 0x113   :  { %596 = vmatpush1.msra.mxu1 %v507_v50  ;;  %v379_v50 = vld [vmem:[#allocation10 + $0x10] sm:$0xff] }
 0x114   :  { %597 = vmatprep.subr.mxu1 %v498_v51  ;;  %v532_v51 = vld [vmem:[#allocation10 + $0x4d8] sm:$0xff] }
 0x115   :  { %598 = vmatpush1.msra.mxu1 %v497_v52  ;;  %v534_v52 = vld [vmem:[#allocation10 + $0x4e8] sm:$0xff] }
 0x116   :  { %599 = vmatprep.subr.mxu1 %v488_v53  ;;  %v1024_v53 = vld [vmem:[%s1452_s6] ss:$0 sm:$0xff] }
 0x117   :  { %600 = vmatpush1.msra.mxu1 %v487_v54 }
 0x118   :  { %601 = vmatprep.subr.mxu1 %v478_v55 }
 0x119   :  { %602 = vmatpush1.msra.mxu1 %v477_v56 }
 0x11a   :  { %603 = vmatprep.subr.mxu1 %v468_v57 }
 0x11b   :  { %604 = vmatpush1.msra.mxu1 %v467_v58 }
 0x11c   :  { %605 = vmatprep.subr.mxu1 %v458_v59  ;;  %v531_v59 = vld [vmem:[#allocation10 + $0x4d0] sm:$0xff] }
 0x11d   :  { %606 = vmatpush1.msra.mxu1 %v457_v60  ;;  %v533_v60 = vld [vmem:[#allocation10 + $0x4e0] sm:$0xff] }
 0x11e   :  { %607 = vmatprep.subr.mxu1 %v448_v61  ;;  %v522_v61 = vld [vmem:[#allocation10 + $0x488] sm:$0xff] }
 0x11f   :  { %608 = vmatpush1.msra.mxu1 %v447_v62  ;;  %v524_v62 = vld [vmem:[#allocation10 + $0x498] sm:$0xff] }
 0x120   :  { %609 = vmatprep.subr.mxu1 %v438_v63  ;;  %v521_v63 = vld [vmem:[#allocation10 + $0x480] sm:$0xff] }
 0x121   :  { %610 = vmatpush1.msra.mxu1 %v437_v1  ;;  %v523_v1 = vld [vmem:[#allocation10 + $0x490] sm:$0xff] }
 0x122   :  { %611 = vmatprep.subr.mxu1 %v428_v2  ;;  %v512_v2 = vld [vmem:[#allocation10 + $0x438] sm:$0xff] }
 0x123   :  { %612 = vmatpush1.msra.mxu1 %v427_v3  ;;  %v514_v3 = vld [vmem:[#allocation10 + $0x448] sm:$0xff] }
 0x124   :  { %613 = vmatprep.subr.mxu1 %v418_v4  ;;  %v511_v4 = vld [vmem:[#allocation10 + $0x430] sm:$0xff] }
 0x125   :  { %614 = vmatpush1.msra.mxu1 %v417_v5  ;;  %v513_v5 = vld [vmem:[#allocation10 + $0x440] sm:$0xff] }
 0x126   :  { %615 = vmatprep.subr.mxu1 %v408_v6  ;;  %v502_v6 = vld [vmem:[#allocation10 + $0x3e8] sm:$0xff] }
 0x127   :  { %616 = vmatpush1.msra.mxu1 %v407_v7  ;;  %v504_v7 = vld [vmem:[#allocation10 + $0x3f8] sm:$0xff] }
 0x128   :  { %617 = vmatprep.subr.mxu1 %v398_v39  ;;  %v424_v39 = vld [vmem:[#allocation10 + $0x178] sm:$0xff] }
 0x129   :  { %618 = vmatpush1.msra.mxu1 %v397_v41  ;;  %v423_v41 = vld [vmem:[#allocation10 + $0x170] sm:$0xff] }
 0x12a   :  { %619 = vmatprep.subr.mxu1 %v388_v43  ;;  %v414_v43 = vld [vmem:[#allocation10 + $0x128] sm:$0xff] }
 0x12b   :  { %620 = vmatpush1.msra.mxu1 %v387_v45  ;;  %v413_v45 = vld [vmem:[#allocation10 + $0x120] sm:$0xff] }
 0x12c   :  { %621 = vmatprep.subr.mxu1 %v378_v47  ;;  %v404_v47 = vld [vmem:[#allocation10 + $0xd8] sm:$0xff] }
 0x12d   :  { %622 = vmatpush1.msra.mxu1 %v377_v49  ;;  %v403_v49 = vld [vmem:[#allocation10 + $0xd0] sm:$0xff] }
 0x12e   :  { %733 = vmatprep.subr.mxu1 %v532_v51  ;;  %v394_v51 = vld [vmem:[#allocation10 + $0x88] sm:$0xff] }
 0x1ce   :  { %v276_v9 = vpop.f32.mrf.mxu1 }
 0x1cf   :  { %v277_v10 = vadd.f32 %v1023_v8, %v276_v9  ;;  %v501_v8 = vld [vmem:[#allocation10 + $0x3e0] sm:$0xff]  ;;  %v503_v9 = vld [vmem:[#allocation10 + $0x3f0] sm:$0xff] }
 0x1d0   :  { %v1110_v11 = vpop.f32.mrf.mxu1 }
 0x1d1   :  { %v280_v12 = vmul.f32 0.2, %v277_v10  ;;  %v494_v11 = vld [vmem:[#allocation10 + $0x3a8] sm:$0xff] }
 0x1d3   :  { %v281_v13 = vmax.f32 %v277_v10, %v280_v12  ;;  %v492_v10 = vld [vmem:[#allocation10 + $0x398] sm:$0xff]  ;;  %v491_v12 = vld [vmem:[#allocation10 + $0x390] sm:$0xff] }
 0x1d5   :  { %1144 = vmatmul.mubr.f32.vlgmr.msra.gmra.mxu0 %v281_v13  ;;  %v493_v13 = vld [vmem:[#allocation10 + $0x3a0] sm:$0xff] }
 0x1d6   :  { %663 = vmatpush1.msra.mxu0 %v529_v14  ;;  %726 = vmatprep.mubr.f32.mxu0 %v1296_v0  ;;  %v482_v14 = vld [vmem:[#allocation10 + $0x348] sm:$0xff] }
 0x1d7   :  { %664 = vmatprep.subr.mxu0 %v520_v15  ;;  %v484_v15 = vld [vmem:[#allocation10 + $0x358] sm:$0xff] }
 0x1d8   :  { %665 = vmatpush1.msra.mxu0 %v519_v16  ;;  %v481_v16 = vld [vmem:[#allocation10 + $0x340] sm:$0xff] }
 0x1d9   :  { %666 = vmatprep.subr.mxu0 %v510_v17  ;;  %v483_v17 = vld [vmem:[#allocation10 + $0x350] sm:$0xff] }
 0x1da   :  { %667 = vmatpush1.msra.mxu0 %v509_v18  ;;  %v472_v18 = vld [vmem:[#allocation10 + $0x2f8] sm:$0xff] }
 0x1db   :  { %668 = vmatprep.subr.mxu0 %v500_v19  ;;  %v474_v19 = vld [vmem:[#allocation10 + $0x308] sm:$0xff] }
 0x1dc   :  { %669 = vmatpush1.msra.mxu0 %v499_v20  ;;  %v471_v20 = vld [vmem:[#allocation10 + $0x2f0] sm:$0xff] }
 0x1dd   :  { %670 = vmatprep.subr.mxu0 %v490_v21  ;;  %v473_v21 = vld [vmem:[#allocation10 + $0x300] sm:$0xff] }
 0x1de   :  { %671 = vmatpush1.msra.mxu0 %v489_v22  ;;  %v462_v22 = vld [vmem:[#allocation10 + $0x2a8] sm:$0xff] }
 0x1df   :  { %672 = vmatprep.subr.mxu0 %v480_v23  ;;  %v464_v23 = vld [vmem:[#allocation10 + $0x2b8] sm:$0xff] }
 0x1e0   :  { %673 = vmatpush1.msra.mxu0 %v479_v24  ;;  %v461_v24 = vld [vmem:[#allocation10 + $0x2a0] sm:$0xff] }
 0x1e1   :  { %674 = vmatprep.subr.mxu0 %v470_v25  ;;  %v463_v25 = vld [vmem:[#allocation10 + $0x2b0] sm:$0xff] }
 0x1e2   :  { %675 = vmatpush1.msra.mxu0 %v469_v26  ;;  %v452_v26 = vld [vmem:[#allocation10 + $0x258] sm:$0xff] }
 0x1e3   :  { %676 = vmatprep.subr.mxu0 %v460_v27  ;;  %v454_v27 = vld [vmem:[#allocation10 + $0x268] sm:$0xff] }
 0x1e4   :  { %677 = vmatpush1.msra.mxu0 %v459_v28  ;;  %v451_v28 = vld [vmem:[#allocation10 + $0x250] sm:$0xff] }
 0x1e5   :  { %678 = vmatprep.subr.mxu0 %v450_v29  ;;  %v453_v29 = vld [vmem:[#allocation10 + $0x260] sm:$0xff] }
 0x1e6   :  { %679 = vmatpush1.msra.mxu0 %v449_v30  ;;  %v442_v30 = vld [vmem:[#allocation10 + $0x208] sm:$0xff] }
 0x1e7   :  { %680 = vmatprep.subr.mxu0 %v440_v31  ;;  %v444_v31 = vld [vmem:[#allocation10 + $0x218] sm:$0xff] }
 0x1e8   :  { %681 = vmatpush1.msra.mxu0 %v439_v32  ;;  %v441_v32 = vld [vmem:[#allocation10 + $0x200] sm:$0xff] }
 0x1e9   :  { %682 = vmatprep.subr.mxu0 %v430_v33  ;;  %v443_v33 = vld [vmem:[#allocation10 + $0x210] sm:$0xff] }
 0x1ea   :  { %683 = vmatpush1.msra.mxu0 %v429_v34  ;;  %v432_v34 = vld [vmem:[#allocation10 + $0x1b8] sm:$0xff] }
 0x1eb   :  { %684 = vmatprep.subr.mxu0 %v420_v35  ;;  %v434_v35 = vld [vmem:[#allocation10 + $0x1c8] sm:$0xff] }
 0x1ec   :  { %685 = vmatpush1.msra.mxu0 %v419_v36  ;;  %v431_v36 = vld [vmem:[#allocation10 + $0x1b0] sm:$0xff] }
 0x1ed   :  { %686 = vmatprep.subr.mxu0 %v410_v37  ;;  %v433_v37 = vld [vmem:[#allocation10 + $0x1c0] sm:$0xff] }
 0x1ee   :  { %687 = vmatpush1.msra.mxu0 %v409_v38  ;;  %v422_v38 = vld [vmem:[#allocation10 + $0x168] sm:$0xff] }
 0x1ef   :  { %688 = vmatprep.subr.mxu0 %v400_v40  ;;  %v421_v40 = vld [vmem:[#allocation10 + $0x160] sm:$0xff] }
 0x1f0   :  { %689 = vmatpush1.msra.mxu0 %v399_v42  ;;  %v412_v42 = vld [vmem:[#allocation10 + $0x118] sm:$0xff] }
 0x1f1   :  { %690 = vmatprep.subr.mxu0 %v390_v44  ;;  %v411_v44 = vld [vmem:[#allocation10 + $0x110] sm:$0xff] }
 0x1f2   :  { %691 = vmatpush1.msra.mxu0 %v389_v46  ;;  %v402_v46 = vld [vmem:[#allocation10 + $0xc8] sm:$0xff] }
 0x1f3   :  { %692 = vmatprep.subr.mxu0 %v380_v48  ;;  %v401_v48 = vld [vmem:[#allocation10 + $0xc0] sm:$0xff] }
 0x1f4   :  { %693 = vmatpush1.msra.mxu0 %v379_v50  ;;  %v392_v50 = vld [vmem:[#allocation10 + $0x78] sm:$0xff] }
 0x1f5   :  { %804 = vmatprep.subr.mxu0 %v534_v52  ;;  %v391_v52 = vld [vmem:[#allocation10 + $0x70] sm:$0xff] }
 0x295   :  { %v371_v54 = vpop.f32.mrf.mxu0 }
 0x296   :  { %v372_v55 = vadd.f32 %v1024_v53, %v371_v54  ;;  %v393_v53 = vld [vmem:[#allocation10 + $0x80] sm:$0xff]  ;;  %v382_v54 = vld [vmem:[#allocation10 + $0x28] sm:$0xff] }
 0x297   :  { %v1145_v56 = vpop.f32.mrf.mxu0 }
 0x298   :  { %v375_v57 = vmul.f32 0.2, %v372_v55  ;;  %v381_v56 = vld [vmem:[#allocation10 + $0x20] sm:$0xff] }
 0x29a   :  { %v1427_v58 = vmax.f32 %v372_v55, %v375_v57  ;;  %v384_v55 = vld [vmem:[#allocation10 + $0x38] sm:$0xff]  ;;  %v383_v57 = vld [vmem:[#allocation10 + $0x30] sm:$0xff] }
 0x29c   :  { %656 = vmatmul.mubr.f32.vlgmr.msra.gmra.mxu1 %v1427_v58  ;;  %727 = vmatmul.mubr.f32.vlgmr.msra.gmra.mxu0 %v1427_v58 }
 0x29d   :  { %734 = vmatpush1.msra.mxu1 %v531_v59  ;;  %805 = vmatpush1.msra.mxu0 %v533_v60  ;;  %v536_v59 = vld [vmem:[#allocation10 + $0x4f8] sm:$0xff]  ;;  %v535_v60 = vld [vmem:[#allocation10 + $0x4f0] sm:$0xff] }
 0x29e   :  { %735 = vmatprep.subr.mxu1 %v522_v61  ;;  %806 = vmatprep.subr.mxu0 %v524_v62  ;;  %v526_v61 = vld [vmem:[#allocation10 + $0x4a8] sm:$0xff]  ;;  %v525_v62 = vld [vmem:[#allocation10 + $0x4a0] sm:$0xff] }
 0x29f   :  { %736 = vmatpush1.msra.mxu1 %v521_v63  ;;  %807 = vmatpush1.msra.mxu0 %v523_v1  ;;  %v516_v63 = vld [vmem:[#allocation10 + $0x458] sm:$0xff]  ;;  %v515_v1 = vld [vmem:[#allocation10 + $0x450] sm:$0xff] }
 0x2a0   :  { %737 = vmatprep.subr.mxu1 %v512_v2  ;;  %808 = vmatprep.subr.mxu0 %v514_v3  ;;  %v506_v2 = vld [vmem:[#allocation10 + $0x408] sm:$0xff]  ;;  %v505_v3 = vld [vmem:[#allocation10 + $0x400] sm:$0xff] }
 0x2a1   :  { %738 = vmatpush1.msra.mxu1 %v511_v4  ;;  %809 = vmatpush1.msra.mxu0 %v513_v5  ;;  %v496_v4 = vld [vmem:[#allocation10 + $0x3b8] sm:$0xff]  ;;  %v495_v5 = vld [vmem:[#allocation10 + $0x3b0] sm:$0xff] }
 0x2a2   :  { %739 = vmatprep.subr.mxu1 %v502_v6  ;;  %810 = vmatprep.subr.mxu0 %v504_v7  ;;  %v486_v6 = vld [vmem:[#allocation10 + $0x368] sm:$0xff]  ;;  %v485_v7 = vld [vmem:[#allocation10 + $0x360] sm:$0xff] }
 0x2a3   :  { %740 = vmatpush1.msra.mxu1 %v501_v8  ;;  %811 = vmatpush1.msra.mxu0 %v503_v9  ;;  %v476_v8 = vld [vmem:[#allocation10 + $0x318] sm:$0xff]  ;;  %v466_v9 = vld [vmem:[#allocation10 + $0x2c8] sm:$0xff] }
 0x2a4   :  { %741 = vmatprep.subr.mxu1 %v492_v10  ;;  %812 = vmatprep.subr.mxu0 %v494_v11  ;;  %v465_v10 = vld [vmem:[#allocation10 + $0x2c0] sm:$0xff]  ;;  %v456_v11 = vld [vmem:[#allocation10 + $0x278] sm:$0xff] }
 0x2a5   :  { %742 = vmatpush1.msra.mxu1 %v491_v12  ;;  %813 = vmatpush1.msra.mxu0 %v493_v13  ;;  %v455_v12 = vld [vmem:[#allocation10 + $0x270] sm:$0xff]  ;;  %v446_v13 = vld [vmem:[#allocation10 + $0x228] sm:$0xff] }
 0x2a6   :  { %743 = vmatprep.subr.mxu1 %v482_v14  ;;  %814 = vmatprep.subr.mxu0 %v484_v15  ;;  %v445_v14 = vld [vmem:[#allocation10 + $0x220] sm:$0xff]  ;;  %v436_v15 = vld [vmem:[#allocation10 + $0x1d8] sm:$0xff] }
 0x2a7   :  { %744 = vmatpush1.msra.mxu1 %v481_v16  ;;  %815 = vmatpush1.msra.mxu0 %v483_v17  ;;  %v435_v16 = vld [vmem:[#allocation10 + $0x1d0] sm:$0xff]  ;;  %v426_v17 = vld [vmem:[#allocation10 + $0x188] sm:$0xff] }
 0x2a8   :  { %745 = vmatprep.subr.mxu1 %v472_v18  ;;  %816 = vmatprep.subr.mxu0 %v474_v19  ;;  %v425_v18 = vld [vmem:[#allocation10 + $0x180] sm:$0xff]  ;;  %v416_v19 = vld [vmem:[#allocation10 + $0x138] sm:$0xff] }
 0x2a9   :  { %746 = vmatpush1.msra.mxu1 %v471_v20  ;;  %817 = vmatpush1.msra.mxu0 %v473_v21  ;;  %v415_v20 = vld [vmem:[#allocation10 + $0x130] sm:$0xff]  ;;  %v406_v21 = vld [vmem:[#allocation10 + $0xe8] sm:$0xff] }
 0x2aa   :  { %747 = vmatprep.subr.mxu1 %v462_v22  ;;  %818 = vmatprep.subr.mxu0 %v464_v23  ;;  %v405_v22 = vld [vmem:[#allocation10 + $0xe0] sm:$0xff]  ;;  %v396_v23 = vld [vmem:[#allocation10 + $0x98] sm:$0xff] }
 0x2ab   :  { %748 = vmatpush1.msra.mxu1 %v461_v24  ;;  %819 = vmatpush1.msra.mxu0 %v463_v25  ;;  %v395_v24 = vld [vmem:[#allocation10 + $0x90] sm:$0xff]  ;;  %v386_v25 = vld [vmem:[#allocation10 + $0x48] sm:$0xff] }
 0x2ac   :  { %749 = vmatprep.subr.mxu1 %v452_v26  ;;  %820 = vmatprep.subr.mxu0 %v454_v27  ;;  %v385_v26 = vld [vmem:[#allocation10 + $0x40] sm:$0xff]  ;;  %v541_v27 = vlaneseq }
 0x2ad   :  { %750 = vmatpush1.msra.mxu1 %v451_v28  ;;  %821 = vmatpush1.msra.mxu0 %v453_v29  ;;  %v1298_v29 = vmov 1983009808  }
 0x2ae   :  { %751 = vmatprep.subr.mxu1 %v442_v30  ;;  %822 = vmatprep.subr.mxu0 %v444_v31  ;;  %v542_v28 = vshrl.u32 %v541_v27, 7  ;;  %v959_v30 = vunpack.c.l.s4 %v1298_v29 }
 0x2af   :  { %752 = vmatpush1.msra.mxu1 %v441_v32  ;;  %823 = vmatpush1.msra.mxu0 %v443_v33 }
 0x2b0   :  { %753 = vmatprep.subr.mxu1 %v432_v34  ;;  %824 = vmatprep.subr.mxu0 %v434_v35  ;;  %v543_v31 = vsub.s32 0, %v542_v28  ;;  %v551_v32 = vsub.s32 2, %v542_v28  ;;  %v547_v33 = vsub.s32 1, %v542_v28  ;;  %v555_v34 = vsub.s32 3, %v542_v28  ;;  %v537_v35 = vld [vmem:[%s1454_s8] sm:$0xff] }
 0x2b1   :  { %754 = vmatpush1.msra.mxu1 %v431_v36  ;;  %825 = vmatpush1.msra.mxu0 %v433_v37  ;;  %v960_v36 = vunpack.c.0.s8 %v959_v30 }
 0x2b2   :  { %755 = vmatprep.subr.mxu1 %v422_v38  ;;  %826 = vmatprep.subr.mxu0 %v424_v39  ;;  %v544_v37 = vrot.slane %v537_v35, %v543_v31  ;;  %v552_v38 = vrot.slane %v537_v35, %v551_v32  ;;  %v548_v39 = vrot.slane %v537_v35, %v547_v33 }
 0x2b3   :  { %756 = vmatpush1.msra.mxu1 %v421_v40  ;;  %827 = vmatpush1.msra.mxu0 %v423_v41  ;;  %v556_v40 = vrot.slane %v537_v35, %v555_v34 }
 0x2b4   :  { %757 = vmatprep.subr.mxu1 %v412_v42  ;;  %828 = vmatprep.subr.mxu0 %v414_v43  ;;  %v963_v43 = vsub.s32 %v960_v36, %v542_v28 }
 0x2b5   :  { %758 = vmatpush1.msra.mxu1 %v411_v44  ;;  %829 = vmatpush1.msra.mxu0 %v413_v45 }
 0x2b6   :  { %759 = vmatprep.subr.mxu1 %v402_v46  ;;  %830 = vmatprep.subr.mxu0 %v404_v47 }
 0x2b7   :  { %760 = vmatpush1.msra.mxu1 %v401_v48  ;;  %831 = vmatpush1.msra.mxu0 %v403_v49 }
 0x2b8   :  { %761 = vmatprep.subr.mxu1 %v392_v50  ;;  %832 = vmatprep.subr.mxu0 %v394_v51 }
 0x2b9   :  { %762 = vmatpush1.msra.mxu1 %v391_v52  ;;  %833 = vmatpush1.msra.mxu0 %v393_v53 }
 0x2ba   :  { %763 = vmatprep.subr.mxu1 %v382_v54  ;;  %834 = vmatprep.subr.mxu0 %v384_v55  ;;  %v559_v54 = vsub.s32 4, %v542_v28  ;;  %v567_v55 = vsub.s32 6, %v542_v28 }
 0x2bb   :  { %764 = vmatpush1.msra.mxu1 %v381_v56  ;;  %797 = vmatprep.mubr.f32.mxu1 %v1296_v0  ;;  %v563_v56 = vsub.s32 5, %v542_v28 }
 0x2bc   :  { %835 = vmatpush1.msra.mxu0 %v383_v57  ;;  %868 = vmatprep.mubr.f32.mxu0 %v1296_v0  ;;  %v571_v57 = vsub.s32 7, %v542_v28 }
 0x2bd   :  { %798 = vmatmul.mubr.f32.vlgmr.msra.gmra.mxu1 %v1427_v58  ;;  %869 = vmatmul.mubr.f32.vlgmr.msra.gmra.mxu0 %v1427_v58 }
 0x2be   :  { %875 = vmatprep.subr.mxu1 %v536_v59  ;;  %939 = vmatprep.mubr.f32.mxu1 %v1296_v0  ;;  %v475_v0 = vld [vmem:[#allocation10 + $0x310] sm:$0xff]  ;;  %v560_v59 = vrot.slane %v537_v35, %v559_v54 }
 0x2bf   :  { %876 = vmatpush1.msra.mxu1 %v535_v60  ;;  %v568_v60 = vrot.slane %v537_v35, %v567_v55 }
 0x2c0   :  { %877 = vmatprep.subr.mxu1 %v526_v61  ;;  %v564_v61 = vrot.slane %v537_v35, %v563_v56 }
 0x2c1   :  { %878 = vmatpush1.msra.mxu1 %v525_v62  ;;  %v572_v62 = vrot.slane %v537_v35, %v571_v57 }
 0x2c2   :  { %879 = vmatprep.subr.mxu1 %v516_v63 }
 0x2c3   :  { %880 = vmatpush1.msra.mxu1 %v515_v1 }
 0x2c4   :  { %881 = vmatprep.subr.mxu1 %v506_v2 }
 0x2c5   :  { %882 = vmatpush1.msra.mxu1 %v505_v3 }
 0x2c6   :  { %883 = vmatprep.subr.mxu1 %v496_v4 }
 0x2c7   :  { %884 = vmatpush1.msra.mxu1 %v495_v5 }
 0x2c8   :  { %885 = vmatprep.subr.mxu1 %v486_v6 }
 0x2c9   :  { %886 = vmatpush1.msra.mxu1 %v485_v7 }
 0x2ca   :  { %887 = vmatprep.subr.mxu1 %v476_v8 }
 0x2cb   :  { %888 = vmatpush1.msra.mxu1 %v475_v0 }
 0x2cc   :  { %889 = vmatprep.subr.mxu1 %v466_v9 }
 0x2cd   :  { %890 = vmatpush1.msra.mxu1 %v465_v10 }
 0x2ce   :  { %891 = vmatprep.subr.mxu1 %v456_v11 }
 0x2cf   :  { %892 = vmatpush1.msra.mxu1 %v455_v12  ;;  %v538_v12 = vld [vmem:[%s1454_s8 + $0x8] sm:$0x3] }
 0x2d0   :  { %893 = vmatprep.subr.mxu1 %v446_v13  ;;  %v576_v13 = vrot.slane %v538_v12, %v543_v31 }
 0x2d1   :  { %894 = vmatpush1.msra.mxu1 %v445_v14  ;;  %v580_v14 = vrot.slane %v538_v12, %v547_v33 }
 0x2d2   :  { %895 = vmatprep.subr.mxu1 %v436_v15 }
 0x2d3   :  { %896 = vmatpush1.msra.mxu1 %v435_v16 }
 0x2d4   :  { %897 = vmatprep.subr.mxu1 %v426_v17 }
 0x2d5   :  { %898 = vmatpush1.msra.mxu1 %v425_v18 }
 0x2d6   :  { %899 = vmatprep.subr.mxu1 %v416_v19 }
 0x2d7   :  { %900 = vmatpush1.msra.mxu1 %v415_v20 }
 0x2d8   :  { %901 = vmatprep.subr.mxu1 %v406_v21 }
 0x2d9   :  { %902 = vmatpush1.msra.mxu1 %v405_v22 }
 0x2da   :  { %903 = vmatprep.subr.mxu1 %v396_v23 }
 0x2db   :  { %904 = vmatpush1.msra.mxu1 %v395_v24 }
 0x2dc   :  { %905 = vmatprep.subr.mxu1 %v386_v25 }
 0x2dd   :  { %906 = vmatpush1.msra.mxu1 %v385_v26 }
 0x2de   :  { %940 = vmatmul.mubr.f32.vlgmr.msra.gmra.mxu1 %v1427_v58 }
 0x35c   :  { %v657_v41 = vpop.f32.mrf.mxu1  ;;  %v728_v42 = vpop.f32.mrf.mxu0 }
 0x35d   :  { %v658_v45 = vadd.f32 %v657_v41, %v544_v37  ;;  %v729_v46 = vadd.f32 %v728_v42, %v552_v38 }
 0x35e   :  { %v659_v58 = vpop.f32.mrf.mxu1  ;;  %v730_v44 = vpop.f32.mrf.mxu0 }
 0x35f   :  { %v660_v47 = vadd.f32 %v659_v58, %v548_v39  ;;  %v731_v48 = vadd.f32 %v730_v44, %v556_v40 }
 0x361   :  { %v956_v49 = vcombine.low %v658_v45, %v660_v47  ;;  %v957_v50 = vcombine.low %v729_v46, %v731_v48 }
 0x363   :  { %v964_v51 = vrot.slane %v956_v49, %v963_v43  ;;  %v971_v52 = vrot.slane %v957_v50, %v963_v43 }
 0x365   :  { %v972_v53 = vcombine.low %v964_v51, %v971_v52 }
 0x367   :  { %1001 = vst [vmem:[#allocation11] sm:$0xff] %v972_v53 }
 0x37d   :  { %v799_v63 = vpop.f32.mrf.mxu1  ;;  %v870_v1 = vpop.f32.mrf.mxu0 }
 0x37e   :  { %v800_v4 = vadd.f32 %v799_v63, %v560_v59  ;;  %v871_v5 = vadd.f32 %v870_v1, %v568_v60 }
 0x37f   :  { %v801_v2 = vpop.f32.mrf.mxu1  ;;  %v872_v3 = vpop.f32.mrf.mxu0 }
 0x380   :  { %v802_v6 = vadd.f32 %v801_v2, %v564_v61  ;;  %v873_v7 = vadd.f32 %v872_v3, %v572_v62 }
 0x382   :  { %v973_v8 = vcombine.low %v800_v4, %v802_v6  ;;  %v974_v0 = vcombine.low %v871_v5, %v873_v7 }
 0x384   :  { %v981_v9 = vrot.slane %v973_v8, %v963_v43  ;;  %v988_v10 = vrot.slane %v974_v0, %v963_v43 }
 0x386   :  { %v989_v11 = vcombine.low %v981_v9, %v988_v10 }
 0x388   :  { %1002 = vst [vmem:[#allocation11 + $0x8] sm:$0xff] %v989_v11 }
 0x39e   :  { %v941_v15 = vpop.f32.mrf.mxu1 }
 0x39f   :  { %v942_v17 = vadd.f32 %v941_v15, %v576_v13 }
 0x3a0   :  { %v943_v16 = vpop.f32.mrf.mxu1 }
 0x3a1   :  { %v944_v18 = vadd.f32 %v943_v16, %v580_v14 }
 0x3a3   :  { %v990_v19 = vcombine.low %v942_v17, %v944_v18 }
 0x3a5   :  { %1025 = vst.sshfl [vmem:[#allocation11 + $0x10] sm:$0x33 pattern:$0x76325410] %v990_v19 }
 0x3a6   :  { %1270 = shalt.err (!%p1267_p1)
}
 0x3a7   :  { %1013 = dma.vmem_to_hbm [thread:$0]  %s1011_s20, 320, %s1455_s9, [#allocation4]  }
 0x3a8   :  { %1285 = dma.done.wait [#allocation4], 320  }
 0x3a9   :  { %1286 = vsyncadd [#allocation4], 4294966976 }
 0x3aa   :  { %1017 = vsyncpa [#allocation3], 1 }
 0x3ab   :  { %1018 = vsyncpa [#allocation6], 1 }
 0x3ac   :  { %1019 = vsyncpa [#allocation9], 1 }
 0x3ad   :  { %1020 = vsyncpa [#allocation4], 1 }

</bundles_post_ra>
